<compile_context>
chip_gen: v7x
topology: tpu7x:2x2x1
jax: 0.10.0
libtpu: 0.0.40
codegen_flags: <defaults>
</compile_context>

<pallas_src>
import functools

import jax
import jax.numpy as jnp
from jax import lax
from jax.experimental import pallas as pl
from jax.experimental.pallas import tpu as pltpu


def _dice_kernel(flags_ref, logits_ref, labels_ref, out_ref, acc_ref, *,
                 hw, tile_hw, tiles_per_super, n_super, ignore_index,
                 need_mask):
    """grid = (image*superblock g [parallel], spatial tile t [reduction])."""
    t = pl.program_id(1)

    @pl.when(t == 0)
    def _init():
        acc_ref[...] = jnp.zeros_like(acc_ref)

    do_replace = flags_ref[0]   # 1 iff the PyTorch replacement branch fires
    tgt_min = flags_ref[1]      # target.min()

    x = logits_ref[...].astype(jnp.float32)        # (C, TILE_HW), classes on sublanes
    lab = labels_ref[...].astype(jnp.int32)        # (1, TILE_HW)
    lab = jnp.where(
        jnp.logical_and(do_replace == 1, lab == ignore_index), tgt_min, lab)

    # Softmax over the (small) class axis; only the label-gathered probability
    # is needed, so gather with a one-hot select + sublane (XLU) sum and divide
    # the resulting (1, TILE_HW) numerator exactly.
    m = jnp.max(x, axis=0, keepdims=True)          # (1, TILE_HW)
    e = jnp.exp(x - m)                             # (C, TILE_HW)
    se = jnp.sum(e, axis=0, keepdims=True)         # (1, TILE_HW)

    cls = lax.broadcasted_iota(jnp.int32, x.shape, 0)
    num = jnp.sum(jnp.where(cls == lab, e, 0.0), axis=0, keepdims=True)
    prob = num / se                                # (1, TILE_HW) per-pixel p_label

    if need_mask:                                  # ragged last spatial tile only
        if n_super > 1:
            blk = (pl.program_id(0) % n_super) * tiles_per_super + t
        else:
            blk = t
        col = lax.broadcasted_iota(jnp.int32, prob.shape, 1)
        # Hardware select: kills any NaN/Inf coming from padded OOB columns.
        prob = jnp.where(col < hw - blk * tile_hw, prob, 0.0)

    # Pure element-wise accumulate into a tiny per-pixel buffer; the expensive
    # cross-lane reduction runs once per (image, superblock).
    acc_ref[...] += prob

    @pl.when(t == pl.num_programs(1) - 1)
    def _finalize():
        out_ref[...] = jnp.sum(acc_ref[...], keepdims=True)   # (1, 1)


def _round_up(x, m):
    return -(-x // m) * m


def _vmem_budget():
    """(working-set target bytes, vmem_limit_bytes) per TPU generation."""
    try:
        vmem = pltpu.get_tpu_info().vmem_capacity_bytes
    except Exception:
        vmem = 64 * 1024 * 1024                    # assume smallest (v7x)
    if vmem >= 100 * 1024 * 1024:                  # v5e / v6e: 128 MiB VMEM
        return 12 * 1024 * 1024, 96 * 1024 * 1024
    return 4 * 1024 * 1024, 48 * 1024 * 1024       # v7x ceiling (64 MiB phys)


def _pick_tile_hw(hw, c, itemsize, target_bytes):
    """Largest lane-multiple spatial tile whose real (padded) VMEM footprint
    fits the working-set target.

    Sublane-padding-aware: a (C, tile) block occupies round_up(C, 8*4/itemsize)
    rows; the (1, tile) label block and the (1, tile) f32 accumulator each pad
    to one full sublane tile (32 B per lane column). Inputs are double-buffered
    by the BlockSpec pipeline.
    """
    sub = 8 * max(1, 4 // itemsize)
    logits_col = _round_up(c, sub) * itemsize      # bytes per lane column
    per_col = 2 * (logits_col + 32) + 32           # 2x buffered inputs + acc
    max_lanes = max(128, (target_bytes // per_col) // 128 * 128)
    if hw <= max_lanes:
        return hw            # whole spatial extent (full-dim block is legal)
    return max_lanes         # multiple of 128; ragged tail masked in-kernel


def _pick_n_super(n_images, n_tiles):
    """Split each image's spatial tiles so the parallel grid axis is even
    (v7x has 2 TensorCores); no effect on single-TC v5e/v6e."""
    if n_images % 2 == 0 or n_tiles < 2:
        return 1
    for s in (2, 4):
        if n_tiles % s == 0:
            return s
    return 1


def dice_loss(output, target, *, smooth=1.0, ignore_index=255, tile_hw=None):
    """output: (N, C, H, W) float logits; target: (N, H, W) integer labels."""
    N, C, H, W = output.shape
    HW = H * W

    # NCHW read directly: free reshapes only (no transpose, no dtype copies).
    logits = output.reshape(N, C, HW)              # native dtype (f32 or bf16)
    labels = target.reshape(N, 1, HW)              # native (possibly narrow) dtype

    # Mirrors `if ignore_index not in range(target.min(), target.max())` and
    # `(target == ignore_index).sum() > 0`; the replacement itself happens
    # inside the kernel, driven by these scalar-prefetched flags.  The three
    # reductions read the same operand and fuse into one HBM pass under XLA.
    tmin = jnp.min(target).astype(jnp.int32)
    tmax = jnp.max(target).astype(jnp.int32)
    in_range = jnp.logical_and(ignore_index >= tmin, ignore_index < tmax)
    has_ignore = jnp.any(target == ignore_index)
    do_replace = jnp.logical_and(jnp.logical_not(in_range), has_ignore)
    flags = jnp.stack([do_replace.astype(jnp.int32), tmin])

    target_bytes, vmem_limit = _vmem_budget()
    if tile_hw is None:
        tile_hw = _pick_tile_hw(HW, C, jnp.dtype(logits.dtype).itemsize,
                                target_bytes)
    need_mask = (HW % tile_hw) != 0
    n_tiles = pl.cdiv(HW, tile_hw)
    n_super = _pick_n_super(N, n_tiles)
    tiles_per_super = n_tiles // n_super
    n_units = N * n_super

    if n_super == 1:
        in_map = lambda g, t, flags: (g, 0, t)
    else:
        in_map = lambda g, t, flags: (
            g // n_super, 0, (g % n_super) * tiles_per_super + t)

    partials = pl.pallas_call(
        functools.partial(_dice_kernel, hw=HW, tile_hw=tile_hw,
                          tiles_per_super=tiles_per_super, n_super=n_super,
                          ignore_index=int(ignore_index), need_mask=need_mask),
        out_shape=jax.ShapeDtypeStruct((n_units, 1, 1), jnp.float32),
        grid_spec=pltpu.PrefetchScalarGridSpec(
            num_scalar_prefetch=1,
            grid=(n_units, tiles_per_super),
            in_specs=[
                pl.BlockSpec((None, C, tile_hw), in_map),
                pl.BlockSpec((None, 1, tile_hw), in_map),
            ],
            out_specs=pl.BlockSpec((None, 1, 1), lambda g, t, flags: (g, 0, 0)),
            scratch_shapes=[pltpu.VMEM((1, tile_hw), jnp.float32)],
        ),
        compiler_params=pltpu.CompilerParams(
            dimension_semantics=("parallel", "arbitrary"),
            vmem_limit_bytes=vmem_limit,
        ),
    )(flags, logits, labels)

    intersection = jnp.sum(partials)
    # softmax columns sum to 1 and every (post-replacement) label hits exactly
    # one class, so output_flat.sum() == target_flat.sum() == N*H*W exactly
    # (inputs for which this fails make the PyTorch scatter_ raise).
    denom = 2.0 * float(N * HW) + smooth
    return 1.0 - (2.0 * intersection + smooth) / denom


def _reference_dice_loss(output, target, smooth=1.0, ignore_index=255):
    """Pure-JAX mirror of the PyTorch forward (for correctness checks)."""
    tgt = target.astype(jnp.int32)
    tmin = jnp.min(tgt)
    tmax = jnp.max(tgt)
    in_range = jnp.logical_and(ignore_index >= tmin, ignore_index < tmax)
    has_ig = jnp.any(tgt == ignore_index)
    do_rep = jnp.logical_and(jnp.logical_not(in_range), has_ig)
    tgt = jnp.where(jnp.logical_and(do_rep, tgt == ignore_index), tmin, tgt)
    C = output.shape[1]
    onehot = jax.nn.one_hot(tgt, C, axis=1, dtype=jnp.float32)
    p = jax.nn.softmax(output.astype(jnp.float32), axis=1)
    inter = jnp.sum(p * onehot)
    return 1.0 - (2.0 * inter + smooth) / (jnp.sum(p) + jnp.sum(onehot) + smooth)


if __name__ == "__main__":
    key = jax.random.PRNGKey(0)
    k1, k2, k3, k4, k5 = jax.random.split(key, 5)

    # Test 1: labels always in [0, C); ignore_index never present.
    N, C, H, W = 2, 4, 16, 16
    logits = jax.random.normal(k1, (N, C, H, W), dtype=jnp.float32)
    labels = jax.random.randint(k2, (N, H, W), 0, C, dtype=jnp.int32)
    loss = jax.block_until_ready(dice_loss(logits, labels))
    ref = _reference_dice_loss(logits, labels)
    assert jnp.allclose(loss, ref, atol=1e-3, rtol=1e-3), (loss, ref)

    # Test 2: ~10% pixels carry ignore_index -> in-kernel replacement path.
    labels_ig = jnp.where(jax.random.uniform(k3, (N, H, W)) < 0.1, 255, labels)
    loss2 = jax.block_until_ready(dice_loss(logits, labels_ig))
    ref2 = _reference_dice_loss(logits, labels_ig)
    assert jnp.allclose(loss2, ref2, atol=1e-3, rtol=1e-3), (loss2, ref2)

    # Test 3: ragged spatial extent + forced small tile -> multi-tile + mask.
    H3, W3 = 18, 18
    logits3 = jax.random.normal(k4, (N, C, H3, W3), dtype=jnp.float32)
    labels3 = jax.random.randint(k2, (N, H3, W3), 0, C, dtype=jnp.int32)
    loss3 = jax.block_until_ready(dice_loss(logits3, labels3, tile_hw=128))
    ref3 = _reference_dice_loss(logits3, labels3)
    assert jnp.allclose(loss3, ref3, atol=1e-3, rtol=1e-3), (loss3, ref3)

    # Test 4: N=1 + forced small tile -> spatial superblocking (even parallel axis).
    logits4 = jax.random.normal(k5, (1, C, H, W), dtype=jnp.float32)
    labels4 = jax.random.randint(k3, (1, H, W), 0, C, dtype=jnp.int32)
    loss4 = jax.block_until_ready(dice_loss(logits4, labels4, tile_hw=128))
    ref4 = _reference_dice_loss(logits4, labels4)
    assert jnp.allclose(loss4, ref4, atol=1e-3, rtol=1e-3), (loss4, ref4)

    # Test 5: bf16 logits passed straight through (halves the dominant HBM stream).
    logits_bf16 = logits.astype(jnp.bfloat16)
    loss5 = jax.block_until_ready(dice_loss(logits_bf16, labels))
    ref5 = _reference_dice_loss(logits_bf16, labels)
    assert jnp.allclose(loss5, ref5, atol=2e-3, rtol=2e-3), (loss5, ref5)

    print("KERNEL_OK")
</pallas_src>

<mosaic_0001>
module attributes {stable_mosaic.version = 11 : i64} {
  func.func @_dice_kernel(%arg0: i32, %arg1: i32, %arg2: memref<2xi32, #tpu.memory_space<smem>>, %arg3: memref<1x4x256xf32, #tpu.memory_space<vmem>>, %arg4: memref<1x1x256xi32, #tpu.memory_space<vmem>>, %arg5: memref<1x1x1xf32, #tpu.memory_space<vmem>>, %arg6: memref<1x256xf32, #tpu.memory_space<vmem>>) attributes {dimension_semantics = [#tpu.dimension_semantics<parallel>, #tpu.dimension_semantics<arbitrary>], iteration_bounds = array<i64: 2, 1>, scalar_prefetch = 1 : i64, scratch_operands = 1 : i64, tpu.core_type = #tpu.core_type<tc>, window_params = [{transform_indices = @transform_0, window_bounds = array<i64: 1, 4, 256>}, {transform_indices = @transform_1, window_bounds = array<i64: 1, 1, 256>}, {transform_indices = @transform_2, window_bounds = array<i64: 1, 1, 1>}]} {
    %c0_i32 = arith.constant 0 : i32
    %0 = arith.cmpi eq, %arg1, %c0_i32 : i32
    %1 = arith.extui %0 : i1 to i32
    %c0_i32_0 = arith.constant 0 : i32
    %2 = arith.cmpi ne, %1, %c0_i32_0 : i32
    scf.if %2 {
      %cst_16 = arith.constant 0.000000e+00 : f32
      %37 = vector.broadcast %cst_16 : f32 to vector<1x256xf32>
      %c0_17 = arith.constant 0 : index
      %c0_18 = arith.constant 0 : index
      %38 = vector.load %arg6[%c0_17, %c0_18] : memref<1x256xf32, #tpu.memory_space<vmem>>, vector<1x256xf32>
      tpu.vector_store %arg6[%c0_17, %c0_18], %37 {strides = array<i32>} : memref<1x256xf32, #tpu.memory_space<vmem>>, vector<1x256xf32>,
    } else {
    }
    %c0 = arith.constant 0 : index
    %3 = memref.load %arg2[%c0] : memref<2xi32, #tpu.memory_space<smem>>
    %c1 = arith.constant 1 : index
    %4 = memref.load %arg2[%c1] : memref<2xi32, #tpu.memory_space<smem>>
    %c0_1 = arith.constant 0 : index
    %c0_2 = arith.constant 0 : index
    %c0_3 = arith.constant 0 : index
    %5 = vector.load %arg3[%c0_1, %c0_2, %c0_3] : memref<1x4x256xf32, #tpu.memory_space<vmem>>, vector<1x4x256xf32>
    %6 = vector.shape_cast %5 : vector<1x4x256xf32> to vector<4x256xf32>
    %c0_4 = arith.constant 0 : index
    %c0_5 = arith.constant 0 : index
    %c0_6 = arith.constant 0 : index
    %7 = vector.load %arg4[%c0_4, %c0_5, %c0_6] : memref<1x1x256xi32, #tpu.memory_space<vmem>>, vector<1x1x256xi32>
    %8 = vector.shape_cast %7 : vector<1x1x256xi32> to vector<1x256xi32>
    %c1_i32 = arith.constant 1 : i32
    %9 = arith.cmpi eq, %3, %c1_i32 : i32
    %c255_i32 = arith.constant 255 : i32
    %10 = vector.broadcast %c255_i32 : i32 to vector<1x256xi32>
    %11 = arith.cmpi eq, %8, %10 : vector<1x256xi32>
    %12 = vector.broadcast %9 : i1 to vector<1x256xi1>
    %13 = arith.andi %12, %11 : vector<1x256xi1>
    %14 = vector.broadcast %4 : i32 to vector<1x256xi32>
    %15 = arith.select %13, %14, %8 : vector<1x256xi1>, vector<1x256xi32>
    %cst = arith.constant dense<0xFF800000> : vector<256xf32>
    %16 = vector.multi_reduction <maximumf>, %6, %cst [0] : vector<4x256xf32> to vector<256xf32>
    %17 = vector.shape_cast %16 : vector<256xf32> to vector<1x256xf32>
    %18 = vector.broadcast %17 : vector<1x256xf32> to vector<4x256xf32>
    %19 = arith.subf %6, %18 : vector<4x256xf32>
    %20 = math.exp %19 : vector<4x256xf32>
    %cst_7 = arith.constant dense<0.000000e+00> : vector<256xf32>
    %21 = vector.multi_reduction <add>, %20, %cst_7 [0] : vector<4x256xf32> to vector<256xf32>
    %22 = vector.shape_cast %21 : vector<256xf32> to vector<1x256xf32>
    %23 = tpu.iota {dimensions = array<i32: 0>} : vector<4x256xi32>
    %24 = vector.broadcast %15 : vector<1x256xi32> to vector<4x256xi32>
    %25 = arith.cmpi eq, %23, %24 : vector<4x256xi32>
    %cst_8 = arith.constant 0.000000e+00 : f32
    %26 = vector.broadcast %cst_8 : f32 to vector<4x256xf32>
    %27 = arith.select %25, %20, %26 : vector<4x256xi1>, vector<4x256xf32>
    %cst_9 = arith.constant dense<0.000000e+00> : vector<256xf32>
    %28 = vector.multi_reduction <add>, %27, %cst_9 [0] : vector<4x256xf32> to vector<256xf32>
    %29 = vector.shape_cast %28 : vector<256xf32> to vector<1x256xf32>
    %30 = arith.divf %29, %22 : vector<1x256xf32>
    %c0_10 = arith.constant 0 : index
    %c0_11 = arith.constant 0 : index
    %31 = vector.load %arg6[%c0_10, %c0_11] : memref<1x256xf32, #tpu.memory_space<vmem>>, vector<1x256xf32>
    %32 = arith.addf %31, %30 : vector<1x256xf32>
    %c0_12 = arith.constant 0 : index
    %c0_13 = arith.constant 0 : index
    %33 = vector.load %arg6[%c0_12, %c0_13] : memref<1x256xf32, #tpu.memory_space<vmem>>, vector<1x256xf32>
    tpu.vector_store %arg6[%c0_12, %c0_13], %32 {strides = array<i32>} : memref<1x256xf32, #tpu.memory_space<vmem>>, vector<1x256xf32>,
    %c0_i32_14 = arith.constant 0 : i32
    %34 = arith.cmpi eq, %arg1, %c0_i32_14 : i32
    %35 = arith.extui %34 : i1 to i32
    %c0_i32_15 = arith.constant 0 : i32
    %36 = arith.cmpi ne, %35, %c0_i32_15 : i32
    scf.if %36 {
      %c0_16 = arith.constant 0 : index
      %c0_17 = arith.constant 0 : index
      %37 = vector.load %arg6[%c0_16, %c0_17] : memref<1x256xf32, #tpu.memory_space<vmem>>, vector<1x256xf32>
      %38 = vector.shape_cast %37 : vector<1x256xf32> to vector<1x1x256xf32>
      %cst_18 = arith.constant dense<0.000000e+00> : vector<1xf32>
      %39 = vector.multi_reduction <add>, %38, %cst_18 [1, 2] : vector<1x1x256xf32> to vector<1xf32>
      %40 = vector.shape_cast %39 : vector<1xf32> to vector<1x1x1xf32>
      %41 = vector.extract %40[0, 0, 0] : f32 from vector<1x1x1xf32>
      %42 = vector.broadcast %41 : f32 to vector<1x1xf32>
      %c0_19 = arith.constant 0 : index
      %c0_20 = arith.constant 0 : index
      %c0_21 = arith.constant 0 : index
      %43 = vector.load %arg5[%c0_19, %c0_20, %c0_21] : memref<1x1x1xf32, #tpu.memory_space<vmem>>, vector<1x1x1xf32>
      %44 = vector.shape_cast %43 : vector<1x1x1xf32> to vector<1x1xf32>
      %45 = vector.shape_cast %42 : vector<1x1xf32> to vector<1x1x1xf32>
      tpu.vector_store %arg5[%c0_19, %c0_20, %c0_21], %45 {strides = array<i32>} : memref<1x1x1xf32, #tpu.memory_space<vmem>>, vector<1x1x1xf32>,
    } else {
    }
    return
  }
  func.func @transform_0(%arg0: i32, %arg1: i32, %arg2: memref<2xi32, #tpu.memory_space<smem>>) -> (i32, i32, i32) {
    %c0_i32 = arith.constant 0 : i32
    %c0_i32_0 = arith.constant 0 : i32
    return %arg0, %c0_i32, %arg1 : i32, i32, i32
  }
  func.func @transform_1(%arg0: i32, %arg1: i32, %arg2: memref<2xi32, #tpu.memory_space<smem>>) -> (i32, i32, i32) {
    %c0_i32 = arith.constant 0 : i32
    %c0_i32_0 = arith.constant 0 : i32
    return %arg0, %c0_i32, %arg1 : i32, i32, i32
  }
  func.func @transform_2(%arg0: i32, %arg1: i32, %arg2: memref<2xi32, #tpu.memory_space<smem>>) -> (i32, i32, i32) {
    %c0_i32 = arith.constant 0 : i32
    %c0_i32_0 = arith.constant 0 : i32
    %c0_i32_1 = arith.constant 0 : i32
    return %arg0, %c0_i32, %c0_i32_0 : i32, i32, i32
  }
}

</mosaic_0001>

<bundles_post_ra>
// kernel: tpu_custom_call.1
= control target key start
LH: loop header
LB: loop body
LE: loop exit
PB: predicated region body
PF: predicated region fallthrough
CT: control target
= control target key end

     0   :  { %s813_s0 = inlined_call_operand.hbm [shape: s32[2], index: 0, kind: input, shape index: {}]   ;;  %s814_s1 = inlined_call_operand.hbm [shape: f32[2,4,256], index: 1, kind: input, shape index: {}]   ;;  %s815_s2 = inlined_call_operand.vmem [shape: s32[2,1,256], index: 2, kind: input, shape index: {}]   ;;  %s816_s3 = inlined_call_operand.vmem [shape: f32[2,1,1], index: 3, kind: output, shape index: {}]  }
   0x1   :  { %s530_s14 = scalar_lea.hbm %s813_s0, 16 }
   0x2   :  { %p531_p0 = scmp.ne.s32.totalorder %s813_s0, %s530_s14  ;;  %p534_p1 = scmp.lt.u32.totalorder %s530_s14, %s813_s0 }
   0x4   :  { %p536_p2 = pnand %p534_p1, %p531_p0 }
   0x6   :  { %539 = shalt.err (!%p536_p2)  }
   0x7   :  { %s624_s19 = smov [#allocation4]  }
   0x8   :  { %9 = dma.hbm_to_smem %s813_s0, 16, %s624_s19, [#allocation3] }
   0x9   :  { %594 = dma.done.wait [#allocation3], 16 }
   0xa   :  { %595 = vsyncadd [#allocation3], 4294967280 }
   0xb   :  { %11 = sfence }
   0xc   :  { %12 = vsyncpa [#allocation6], 0 }
   0xd   :  { %14 = vsyncpa [#allocation6 + $0x1], 0  ;;  %s660_s22 = smov 0   ;;  %s662_s23 = smov 0  }
   0xe   :  { %s664_s24 = smov 0   ;;  %s666_s25 = smov 0  }
   0xf   :  { %s668_s26 = smov 0   ;;  %s670_s27 = smov 0  }
  0x10 LB: > { %s449_s0 = sadd.s32 4294967295, %s622_s27   ;;  %s32_s28 = sadd.s32 1, %s618_s26  ;;  %s622_s27 = sphi %s670_s27, %s20_s27   ;;  %s618_s26 = sphi %s668_s26, %s828_s26   ;;  %s614_s25 = sphi %s666_s25, %s827_s25   ;;  %s610_s24 = sphi %s664_s24, %s826_s24   ;;  %s606_s23 = sphi %s662_s23, %s825_s23   ;;  %s602_s22 = sphi %s660_s22, %s824_s22  }
  0x11   : > { %p34_p3 = scmp.ge.s32.totalorder %s32_s28, 2  ;;  %s41_s29 = sadd.s32 1, %s610_s24 }
  0x12   : > { %p48_p4 = scmp.ne.s32.totalorder %s610_s24, %s606_s23  ;;  %p49_p5 = scmp.eq.s32.totalorder %s622_s27, 0 }
  0x13   : > { %s830_s28 = smov (%p34_p3, %s32_s28), 0  ;;  %p54_p7 = scmp.ne.s32.totalorder %s606_s23, %s602_s22 }
  0x14   : > { %p696_p6 = por %p49_p5, %p48_p4  ;;  %s36_s4 = ssub.s32 %s618_s26, %s830_s28 }
  0x15   : > { %p55_p8 = scmp.eq.s32.totalorder %s449_s0, 0  ;;  %p39_p9 = scmp.eq.s32.totalorder %s36_s4, 0 }
  0x16   : > { %p471_p11 = scmp.lt.s32.totalorder %s622_s27, 2  ;;  %s132_s7 = sand.u32 1, %s610_s24  }
  0x17   : > { %p703_p10 = por %p55_p8, %p54_p7  ;;  %s462_s8 = sshll.u32 %s618_s26, 7 }
  0x18   : > { %s709_s6 = scalar_select %p39_p9, %s610_s24, %s41_s29  }
  0x19   : > { %s453_s9 = sshll.u32 %s132_s7, 3  ;;  %s716_s12 = scalar_lea.hbm %s814_s1, %s462_s8 }
  0x1a   : > { %s136_s13 = scalar_lea.vmem [#allocation5], %s453_s9  ;;  %p720_p12 = pnand %p471_p11, %p696_p6 }
  0x1b   : > { %s146_s14 = sshll.u32 %s136_s13, 4  ;;  %s133_s16 = scalar_lea.sflag [#allocation6], %s132_s7  ;;  %s724_s14 = int_to_ptr.vmem [resolvable:$true] %s146_s14 }
  0x1c   : > { %s540_s17 = scalar_lea.hbm %s716_s12, 128  ;;  %p542_p2 = pneg %p720_p12 }
  0x1d   : > { %p541_p1 = scmp.ne.s32.totalorder %s716_s12, %s540_s17  ;;  %s545_s20 = scalar_lea.hbm %s814_s1, 256 }
  0x1e   : > { %p546_p5 = scmp.lt.u32.totalorder %s716_s12, %s814_s1  ;;  %p547_p6 = scmp.lt.u32.totalorder %s545_s20, %s540_s17 }
  0x1f   : > { %p543_p3 = pnand %p542_p2, %p541_p1  ;;  %p549_p8 = scmp.lt.u32.totalorder %s540_s17, %s716_s12 }
  0x20   : > { %p548_p7 = por %p547_p6, %p546_p5 }
  0x21   : > { %p544_p4 = pneg %p543_p3 }
  0x22   : > { %p550_p9 = por %p549_p8, %p548_p7 }
  0x24   : > { %p551_p11 = pnand %p550_p9, %p544_p4 }
  0x26   : > { %554 = shalt.err (!%p551_p11)
}
  0x27   : > { %s555_s0 = scalar_lea.vmem %s724_s14, 128  ;;  %s625_s29 = smov [#allocation5]  }
  0x28   : > { %p556_p1 = scmp.ne.s32.totalorder %s724_s14, %s555_s0  ;;  %s560_s30 = sshll.u32 %s625_s29, 4  ;;  %s561_s30 = int_to_ptr.vmem [resolvable:$false] %s560_s30 }
  0x29   : > { %s562_s4 = scalar_lea.vmem %s561_s30, 256  ;;  %p563_p0 = scmp.lt.s32.totalorder %s724_s14, %s561_s30 }
  0x2a   : > { %p558_p3 = pnand %p556_p1, %p542_p2  ;;  %p564_p5 = scmp.lt.s32.totalorder %s562_s4, %s555_s0 }
  0x2c   : > { %p559_p13 = pneg %p558_p3  ;;  %p565_p6 = por %p564_p5, %p563_p0 }
  0x2e   : > { %p566_p7 = pnand %p565_p6, %p559_p13 }
  0x30   : > { %569 = shalt.err (!%p566_p7)
}
  0x31   : > { %470 = dma.hbm_to_vmem [thread:$0]  (!%p720_p12), %s716_s12, 128, %s724_s14, %s133_s16  }
  0x32   : > { %p820_p4 = scmp.lt.s32.totalorder %s622_s27, 3  ;;  %p821_p8 = scmp.ge.s32.totalorder %s622_s27, 1 }
  0x34   : > { %p164_p2 = pnand %p821_p8, %p820_p4 }
  0x35   : > { %s169_s7 = sand.u32 (!%p164_p2), 1, %s606_s23  }
  0x36   : > { %167 = sbr.rel (%p164_p2) target bundleno = 350 (0x15e), region = 28  ;;  %s457_s8 = sshll.u32 (!%p164_p2), %s169_s7, 3 }
  0x37   : > { %s170_s9 = scalar_lea.sflag (!%p164_p2), [#allocation6], %s169_s7  ;;  %s173_s10 = scalar_lea.vmem (!%p164_p2), [#allocation5], %s457_s8 }
  0x3d   : > { %597 = dma.done.wait (%p703_p10), %s170_s9, 128  }
  0x3e   : > { %599 = vsyncadd (%p703_p10), %s170_s9, 4294967168  ;;  %v217_v0 = vlaneseq  ;;  %v626_v2 = vmov 0.0   ;;  %s222_s11 = sld [smem:[#allocation4]]  ;;  %vm237_vm1 = vcmask 1043456   ;;  %p202_p12 = scmp.lt.s32.totalorder %s614_s25, 1  ;;  %v224_v3 = vld [vmem:[%s173_s10] sm:$0xff] }
  0x3f   : > { %v235_v4 = vcombine.high %v224_v3, %v224_v3  ;;  %v238_v5 = vsel %vm237_vm1, %v224_v3, -inf  ;;  %s459_s16 = sld [smem:[#allocation4 + $0x1]]  ;;  %v627_v61 = vmov 1966171168   ;;  %vm348_vm7 = vcmask 1040384  }
  0x40   : > { %vm762_vm0 = vcmp.lt.s32.totalorder %v217_v0, 256  ;;  %v239_v6 = vrot.slane %v238_v5, 4  ;;  %s832_s25 = smov (!%p202_p12, %s614_s25), 1  ;;  %v778_v23 = vshrl.u32 %v217_v0, 7  ;;  %v313_v62 = vunpack.c.l.s4 %v627_v61 }
  0x41   : > { %221 = vst.msk [vmem:[#allocation2] sm:$0x3] %vm762_vm0, %v626_v2  ;;  %v245_v7 = vsel %vm237_vm1, %v235_v4, -inf  ;;  %s458_s5 = sshll.u32 %s832_s25, 1  ;;  %s212_s19 = scalar_lea.vmem %s816_s3, %s832_s25  ;;  %vm362_vm8 = vcmask 0  }
  0x42   : > { %v240_v8 = vmax.f32 %v238_v5, %v239_v6  ;;  %v246_v9 = vrot.slane %v245_v7, 4  ;;  %s208_s15 = scalar_lea.vmem %s815_s2, %s458_s5  ;;  %v280_v26 = vsub.s32 0, %v778_v23  ;;  %v284_v28 = vsub.s32 1, %v778_v23 }
  0x43   : > { %v225_v18 = vld [vmem:[%s208_s15] sm:$0x3]  ;;  %v314_v2 = vunpack.c.0.s8 %v313_v62 }
  0x44   : > { %p226_p10 = scmp.eq.s32.totalorder %s222_s11, 1  ;;  %v241_v10 = vrot.slane %v240_v8, 2  ;;  %v247_v11 = vmax.f32 %v245_v7, %v246_v9  ;;  %vm227_vm2 = vcmp.eq.s32.totalorder %v225_v18, 255 }
  0x45   : > { %v232_v24 = vstv %s459_s16  ;;  %v317_v7 = vsub.s32 %v314_v2, %v778_v23 }
  0x46   : > { %v242_v12 = vmax.f32 %v240_v8, %v241_v10  ;;  %v248_v13 = vrot.slane %v247_v11, 2  ;;  %s228_s12 = scalar_select %p226_p10, 1, 0 }
  0x48   : > { %v243_v14 = vrot.slane %v242_v12, 1  ;;  %v249_v15 = vmax.f32 %v247_v11, %v248_v13  ;;  %v229_v19 = vstv %s228_s12  ;;  %v308_v10 = vld [vmem:[#allocation2] sm:$0x3] }
  0x49   : > { %vm230_vm3 = vcmp.eq.s32.totalorder %v229_v19, 1 }
  0x4a   : > { %v244_v16 = vmax.f32 %v242_v12, %v243_v14  ;;  %v250_v17 = vrot.slane %v249_v15, 1  ;;  %vm231_vm4 = vmand %vm230_vm3, %vm227_vm2 }
  0x4b   : > { %v233_v27 = vsel %vm231_vm4, %v232_v24, %v225_v18 }
  0x4c   : > { %v251_v20 = vmax.f32 %v249_v15, %v250_v17  ;;  %v281_v29 = vrot.slane %v233_v27, %v280_v26  ;;  %v285_v30 = vrot.slane %v233_v27, %v284_v28 }
  0x4e   : > { %v254_v21 = vcombine.low %v244_v16, %v251_v20  ;;  %vm286_vm5 = vcmp.eq.s32.totalorder %v778_v23, %v281_v29  ;;  %vm287_vm6 = vcmp.eq.s32.totalorder %v778_v23, %v285_v30 }
  0x50   : > { %v256_v22 = vsub.f32 %v224_v3, %v254_v21 }
  0x52   : > { %v257_v25 = vmul.f32 1.442695, %v256_v22 }
  0x54   : > { %524 = vpow2.f32 %v257_v25 }
  0x5e   : > { %v525_v31 = vpop.eup %524 }
  0x5f   : > { %v260_v32 = vcombine.high %v525_v31, %v525_v31  ;;  %v262_v33 = vsel %vm237_vm1, %v525_v31, 0.0  ;;  %v288_v34 = vsel %vm286_vm5, %v525_v31, 0.0 }
  0x60   : > { %v263_v35 = vrot.slane %v262_v33, 4  ;;  %v290_v36 = vsel %vm237_vm1, %v288_v34, 0.0 }
  0x61   : > { %v269_v37 = vsel %vm237_vm1, %v260_v32, 0.0  ;;  %v289_v38 = vsel %vm287_vm6, %v260_v32, 0.0  ;;  %v291_v39 = vrot.slane %v290_v36, 4 }
  0x62   : > { %v264_v40 = vadd.f32 %v263_v35, %v262_v33  ;;  %v270_v41 = vrot.slane %v269_v37, 4  ;;  %v297_v42 = vsel %vm237_vm1, %v289_v38, 0.0 }
  0x63   : > { %v292_v43 = vadd.f32 %v291_v39, %v290_v36  ;;  %v298_v44 = vrot.slane %v297_v42, 4 }
  0x64   : > { %v265_v45 = vrot.slane %v264_v40, 2  ;;  %v271_v46 = vadd.f32 %v270_v41, %v269_v37 }
  0x65   : > { %v299_v47 = vadd.f32 %v298_v44, %v297_v42  ;;  %v293_v50 = vrot.slane %v292_v43, 2 }
  0x66   : > { %v266_v48 = vadd.f32 %v265_v45, %v264_v40  ;;  %v272_v49 = vrot.slane %v271_v46, 2 }
  0x67   : > { %v300_v53 = vrot.slane %v299_v47, 2  ;;  %v294_v56 = vadd.f32 %v293_v50, %v292_v43 }
  0x68   : > { %v267_v51 = vrot.slane %v266_v48, 1  ;;  %v273_v52 = vadd.f32 %v272_v49, %v271_v46 }
  0x69   : > { %v301_v58 = vadd.f32 %v300_v53, %v299_v47  ;;  %v295_v59 = vrot.slane %v294_v56, 1 }
  0x6a   : > { %v268_v54 = vadd.f32 %v267_v51, %v266_v48  ;;  %v274_v55 = vrot.slane %v273_v52, 1 }
  0x6b   : > { %v302_v60 = vrot.slane %v301_v58, 1  ;;  %v296_v63 = vadd.f32 %v295_v59, %v294_v56 }
  0x6c   : > { %v275_v57 = vadd.f32 %v274_v55, %v273_v52  ;;  %526 = vrcp.f32 %v268_v54 }
  0x6d   : > { %v303_v0 = vadd.f32 %v302_v60, %v301_v58 }
  0x6e   : > { %528 = vrcp.f32 %v275_v57 }
  0x76   : > { %v527_v3 = vpop.eup %526 }
  0x77   : > { %v305_v4 = vmul.f32 %v527_v3, %v296_v63 }
  0x78   : > { %v529_v5 = vpop.eup %528 }
  0x79   : > { %v307_v6 = vmul.f32 %v529_v5, %v303_v0 }
  0x7b   : > { %v311_v8 = vcombine.low %v305_v4, %v307_v6 }
  0x7d   : > { %v318_v9 = vrot.slane %v311_v8, %v317_v7 }
  0x7f   : > { %v325_v11 = vrot.slane %v318_v9, %v317_v7 }
  0x81   : > { %v327_v12 = vadd.f32 %v325_v11, %v308_v10 }
  0x83   : > { %332 = vst.msk [vmem:[#allocation2] sm:$0x3] %vm762_vm0, %v327_v12 }
  0x8a   : > { %v336_v13 = vld [vmem:[#allocation2] sm:$0x3] }
  0x8b   : > { %v341_v14 = vrot.slane %v336_v13, %v280_v26  ;;  %v345_v15 = vrot.slane %v336_v13, %v284_v28 }
  0x8d   : > { %v349_v16 = vsel %vm348_vm7, %v341_v14, 0.0  ;;  %v350_v17 = vsel %vm348_vm7, %v345_v15, 0.0 }
  0x8e   : > { %v351_v18 = vadd.f32 %v350_v17, %v349_v16 }
  0x90   : > { %352 = vadd.xlane.f32.xlu0 %v351_v18 }
 0x11d   : > { %v353_v19 = vpop.xlane.xlu0 %352 }
 0x11e   : > { %v354_v20 = vrot.slane %v353_v19, 4 }
 0x120   : > { %v355_v21 = vadd.f32 %v354_v20, %v353_v19 }
 0x122   : > { %v356_v22 = vrot.slane %v355_v21, 2 }
 0x124   : > { %v357_v23 = vadd.f32 %v356_v22, %v355_v21 }
 0x126   : > { %v358_v24 = vrot.slane %v357_v23, 1 }
 0x128   : > { %v359_v25 = vadd.f32 %v358_v24, %v357_v23 }
 0x12a   : > { %463 = vpush %v359_v25 }
 0x15b   : > { %s464_s20 = spop %463 }
 0x15c   : > { %v361_v1 = vstv %s464_s20 }
 0x15d   : > { %363 = vst.msk [vmem:[%s212_s19] sm:$0x1] %vm362_vm8, %v361_v1 }
 0x15e PF: > { %s20_s27 = sadd.s32 1, %s622_s27   ;;  %s824_s22 = smov %s606_s23 }
 0x15f   : > { %p17_p13 = scmp.ge.s32.totalorder %s20_s27, 4   ;;  %s825_s23 = smov %s610_s24 }
 0x160   : > { %s826_s24 = smov %s709_s6  ;;  %s827_s25 = smov %s618_s26 }
 0x161   : > { %s828_s26 = smov %s830_s28  ;;  %19 = sbr.rel (!%p17_p13) target bundleno = 16 (0x10), region = 79 }
 0x168   :  { %381 = vsyncpa [#allocation6], 1 }
 0x169   :  { %383 = vsyncpa [#allocation6 + $0x1], 1 }

</bundles_post_ra>
